<compile_context>
chip_gen: v7x
topology: tpu7x:2x2x1
jax: 0.10.0
libtpu: 0.0.40
codegen_flags: <defaults>
</compile_context>

<pallas_src>
import jax
import jax.numpy as jnp
from jax.experimental import pallas as pl
from jax.experimental.pallas import tpu as pltpu

INPUT_SIZE = 784
HIDDEN_SIZE = 128
OUTPUT_SIZE = 10
OUT_PAD = 128     # lane-dense output width (pad 10 -> 128)
TM_CAP = 512      # max rows per grid step (mem-bound sweet spot)


def mlp_kernel(x_ref, w1_ref, b1_ref, w2_ref, b2_ref, o_ref):
    # Layer 1: bf16 operands, f32 accumulate on the MXU; bias + ReLU in f32 (VPU).
    h = jnp.dot(x_ref[...], w1_ref[...], preferred_element_type=jnp.float32)
    h = jnp.maximum(h + b1_ref[...], 0.0)        # b1 (1, H) broadcasts over rows
    # Layer 2: cast activations back to bf16 for the MXU; W2/b2 zero-padded to
    # 128 lanes so the final store is an unmasked, lane-dense vst.
    out = jnp.dot(h.astype(jnp.bfloat16), w2_ref[...],
                  preferred_element_type=jnp.float32)
    o_ref[...] = (out + b2_ref[...]).astype(o_ref.dtype)


def _round_up(n, m):
    return ((n + m - 1) // m) * m


def _choose_tiling(B):
    """Pick (padded batch Bp, tile rows TM), both multiples of 8, TM | Bp."""
    Bp8 = _round_up(B, 8)
    if Bp8 <= 128:
        # Single tile: splitting would only add per-step overhead.
        return Bp8, Bp8
    if Bp8 <= 2 * TM_CAP:
        # Split into 2 independent tiles so v7x's two TensorCores both work.
        TM = _round_up((Bp8 + 1) // 2, 8)
        return _round_up(Bp8, TM), TM
    # Big batch: choose TM in [256, 512] (multiple of 8) minimizing padding.
    best_tm = TM_CAP
    best_pad = _round_up(Bp8, TM_CAP) - Bp8
    for tm in range(TM_CAP, 255, -8):
        pad = _round_up(Bp8, tm) - Bp8
        if pad < best_pad:
            best_tm, best_pad = tm, pad
            if pad == 0:
                break
    return Bp8 + best_pad, best_tm


def prepare_params(w1, b1, w2, b2):
    """One-time param prep: bf16 weights, W2/b2 zero-padded to OUT_PAD lanes."""
    w1b = w1.astype(jnp.bfloat16)
    w2p = (jnp.zeros((HIDDEN_SIZE, OUT_PAD), jnp.bfloat16)
           .at[:, :OUTPUT_SIZE].set(w2.astype(jnp.bfloat16)))
    b1f = b1.astype(jnp.float32).reshape(1, HIDDEN_SIZE)
    b2p = (jnp.zeros((1, OUT_PAD), jnp.float32)
           .at[:, :OUTPUT_SIZE].set(b2.astype(jnp.float32).reshape(1, OUTPUT_SIZE)))
    return w1b, b1f, w2p, b2p


def _resident_specs():
    # Weights / biases pinned to block (0, 0): stay VMEM-resident across the grid.
    return [
        pl.BlockSpec((INPUT_SIZE, HIDDEN_SIZE), lambda i: (0, 0)),  # W1 (bf16)
        pl.BlockSpec((1, HIDDEN_SIZE), lambda i: (0, 0)),           # b1 (f32)
        pl.BlockSpec((HIDDEN_SIZE, OUT_PAD), lambda i: (0, 0)),     # W2 padded (bf16)
        pl.BlockSpec((1, OUT_PAD), lambda i: (0, 0)),               # b2 padded (f32)
    ]


def mlp_forward(x, prepared_params):
    """y = relu(x @ W1 + b1) @ W2 + b2, returned as (B, OUTPUT_SIZE) float32."""
    w1b, b1f, w2p, b2p = prepared_params
    B = x.shape[0]
    xb = x.astype(jnp.bfloat16)   # halves the dominant x HBM stream

    if B <= 8:
        # Latency path: no batch padding, full-array blocks, single grid step.
        out_padded = pl.pallas_call(
            mlp_kernel,
            out_shape=jax.ShapeDtypeStruct((B, OUT_PAD), jnp.float32),
            grid=(1,),
            in_specs=[pl.BlockSpec((B, INPUT_SIZE), lambda i: (0, 0))]
                     + _resident_specs(),
            out_specs=pl.BlockSpec((B, OUT_PAD), lambda i: (0, 0)),
            compiler_params=pltpu.CompilerParams(
                dimension_semantics=("arbitrary",)),
        )(xb, w1b, b1f, w2p, b2p)
        return out_padded[:, :OUTPUT_SIZE]

    # Streaming path: tile the batch, shard tiles across TensorCores (v7x).
    Bp, TM = _choose_tiling(B)
    if Bp != B:
        xb = jnp.pad(xb, ((0, Bp - B), (0, 0)))   # padded rows sliced off below
    grid = (Bp // TM,)

    out_padded = pl.pallas_call(
        mlp_kernel,
        out_shape=jax.ShapeDtypeStruct((Bp, OUT_PAD), jnp.float32),
        grid=grid,
        in_specs=[pl.BlockSpec((TM, INPUT_SIZE), lambda i: (i, 0))]   # x: streamed
                 + _resident_specs(),
        out_specs=pl.BlockSpec((TM, OUT_PAD), lambda i: (i, 0)),
        compiler_params=pltpu.CompilerParams(
            # Independent batch tiles -> megacore sharding on v7x.
            dimension_semantics=("parallel",)),
    )(xb, w1b, b1f, w2p, b2p)

    return out_padded[:B, :OUTPUT_SIZE]


def init_params(key):
    """Deterministic init matching nn.Linear's uniform(-1/sqrt(fan_in), ...)."""
    k1, k2, k3, k4 = jax.random.split(key, 4)
    bound1 = 1.0 / jnp.sqrt(INPUT_SIZE)
    bound2 = 1.0 / jnp.sqrt(HIDDEN_SIZE)
    w1 = jax.random.uniform(k1, (INPUT_SIZE, HIDDEN_SIZE), jnp.float32, -bound1, bound1)
    b1 = jax.random.uniform(k2, (1, HIDDEN_SIZE), jnp.float32, -bound1, bound1)
    w2 = jax.random.uniform(k3, (HIDDEN_SIZE, OUTPUT_SIZE), jnp.float32, -bound2, bound2)
    b2 = jax.random.uniform(k4, (1, OUTPUT_SIZE), jnp.float32, -bound2, bound2)
    return w1, b1, w2, b2


def _ref_forward(x, w1, b1, w2, b2):
    return jnp.maximum(x @ w1 + b1, 0.0) @ w2 + b2


if __name__ == "__main__":
    key = jax.random.PRNGKey(0)
    kx, kx2, kp = jax.random.split(key, 3)

    w1, b1, w2, b2 = init_params(kp)
    prepared = prepare_params(w1, b1, w2, b2)   # one-time prep (bf16 + lane pad)

    # --- Small-batch (latency) path: matches the module's x = randn(1, 784). ---
    B = 2
    x = jax.random.normal(kx, (B, INPUT_SIZE), jnp.float32)
    out = jax.block_until_ready(mlp_forward(x, prepared))
    ref = _ref_forward(x, w1, b1, w2, b2)
    assert out.shape == (B, OUTPUT_SIZE)
    # bf16 matmul operands (f32 accumulate) -> loosened tolerance vs. pure f32.
    assert jnp.allclose(out, ref, atol=3e-2, rtol=3e-2), \
        float(jnp.max(jnp.abs(out - ref)))

    # --- Tiled streaming path (also exercises v7x two-tile split + padding). ---
    B2 = 260
    x2 = jax.random.normal(kx2, (B2, INPUT_SIZE), jnp.float32)
    out2 = jax.block_until_ready(mlp_forward(x2, prepared))
    ref2 = _ref_forward(x2, w1, b1, w2, b2)
    assert out2.shape == (B2, OUTPUT_SIZE)
    assert jnp.allclose(out2, ref2, atol=3e-2, rtol=3e-2), \
        float(jnp.max(jnp.abs(out2 - ref2)))

    print("KERNEL_OK")
</pallas_src>

<mosaic_0001>
module attributes {stable_mosaic.version = 11 : i64} {
  func.func @mlp_kernel(%arg0: i32, %arg1: memref<2x784xbf16, #tpu.memory_space<vmem>>, %arg2: memref<784x128xbf16, #tpu.memory_space<vmem>>, %arg3: memref<1x128xf32, #tpu.memory_space<vmem>>, %arg4: memref<128x128xbf16, #tpu.memory_space<vmem>>, %arg5: memref<1x128xf32, #tpu.memory_space<vmem>>, %arg6: memref<2x128xf32, #tpu.memory_space<vmem>>) attributes {dimension_semantics = [#tpu.dimension_semantics<arbitrary>], iteration_bounds = array<i64: 1>, scalar_prefetch = 0 : i64, scratch_operands = 0 : i64, tpu.core_type = #tpu.core_type<tc>, window_params = [{pipeline_mode = #tpu.pipeline_mode<synchronous>, transform_indices = @transform_0, window_bounds = array<i64: 2, 784>}, {pipeline_mode = #tpu.pipeline_mode<synchronous>, transform_indices = @transform_1, window_bounds = array<i64: 784, 128>}, {pipeline_mode = #tpu.pipeline_mode<synchronous>, transform_indices = @transform_2, window_bounds = array<i64: 1, 128>}, {pipeline_mode = #tpu.pipeline_mode<synchronous>, transform_indices = @transform_3, window_bounds = array<i64: 128, 128>}, {pipeline_mode = #tpu.pipeline_mode<synchronous>, transform_indices = @transform_4, window_bounds = array<i64: 1, 128>}, {pipeline_mode = #tpu.pipeline_mode<synchronous>, transform_indices = @transform_5, window_bounds = array<i64: 2, 128>}]} {
    %c0 = arith.constant 0 : index
    %c0_0 = arith.constant 0 : index
    %0 = vector.load %arg1[%c0, %c0_0] : memref<2x784xbf16, #tpu.memory_space<vmem>>, vector<2x784xbf16>
    %c0_1 = arith.constant 0 : index
    %c0_2 = arith.constant 0 : index
    %1 = vector.load %arg2[%c0_1, %c0_2] : memref<784x128xbf16, #tpu.memory_space<vmem>>, vector<784x128xbf16>
    %cst = arith.constant dense<0.000000e+00> : vector<2x128xf32>
    %2 = tpu.matmul %0, %1, %cst {dimension_numbers = #tpu.dot_dimension_numbers<[1], [0], [0], [1], [0, 0, 1, 1], [], []>} : vector<2x784xbf16>, vector<784x128xbf16>, vector<2x128xf32> -> vector<2x128xf32>
    %c0_3 = arith.constant 0 : index
    %c0_4 = arith.constant 0 : index
    %3 = vector.load %arg3[%c0_3, %c0_4] : memref<1x128xf32, #tpu.memory_space<vmem>>, vector<1x128xf32>
    %4 = vector.broadcast %3 : vector<1x128xf32> to vector<2x128xf32>
    %5 = arith.addf %2, %4 : vector<2x128xf32>
    %cst_5 = arith.constant 0.000000e+00 : f32
    %6 = vector.broadcast %cst_5 : f32 to vector<2x128xf32>
    %7 = arith.maximumf %5, %6 : vector<2x128xf32>
    %8 = arith.truncf %7 : vector<2x128xf32> to vector<2x128xbf16>
    %c0_6 = arith.constant 0 : index
    %c0_7 = arith.constant 0 : index
    %9 = vector.load %arg4[%c0_6, %c0_7] : memref<128x128xbf16, #tpu.memory_space<vmem>>, vector<128x128xbf16>
    %cst_8 = arith.constant dense<0.000000e+00> : vector<2x128xf32>
    %10 = tpu.matmul %8, %9, %cst_8 {dimension_numbers = #tpu.dot_dimension_numbers<[1], [0], [0], [1], [0, 0, 1, 1], [], []>} : vector<2x128xbf16>, vector<128x128xbf16>, vector<2x128xf32> -> vector<2x128xf32>
    %c0_9 = arith.constant 0 : index
    %c0_10 = arith.constant 0 : index
    %11 = vector.load %arg5[%c0_9, %c0_10] : memref<1x128xf32, #tpu.memory_space<vmem>>, vector<1x128xf32>
    %12 = vector.broadcast %11 : vector<1x128xf32> to vector<2x128xf32>
    %13 = arith.addf %10, %12 : vector<2x128xf32>
    %c0_11 = arith.constant 0 : index
    %c0_12 = arith.constant 0 : index
    %14 = vector.load %arg6[%c0_11, %c0_12] : memref<2x128xf32, #tpu.memory_space<vmem>>, vector<2x128xf32>
    tpu.vector_store %arg6[%c0_11, %c0_12], %13 {strides = array<i32>} : memref<2x128xf32, #tpu.memory_space<vmem>>, vector<2x128xf32>,
    return
  }
  func.func @transform_0(%arg0: i32) -> (i32, i32) {
    %c0_i32 = arith.constant 0 : i32
    %c0_i32_0 = arith.constant 0 : i32
    %c0_i32_1 = arith.constant 0 : i32
    return %c0_i32, %c0_i32_0 : i32, i32
  }
  func.func @transform_1(%arg0: i32) -> (i32, i32) {
    %c0_i32 = arith.constant 0 : i32
    %c0_i32_0 = arith.constant 0 : i32
    %c0_i32_1 = arith.constant 0 : i32
    return %c0_i32, %c0_i32_0 : i32, i32
  }
  func.func @transform_2(%arg0: i32) -> (i32, i32) {
    %c0_i32 = arith.constant 0 : i32
    %c0_i32_0 = arith.constant 0 : i32
    %c0_i32_1 = arith.constant 0 : i32
    return %c0_i32, %c0_i32_0 : i32, i32
  }
  func.func @transform_3(%arg0: i32) -> (i32, i32) {
    %c0_i32 = arith.constant 0 : i32
    %c0_i32_0 = arith.constant 0 : i32
    %c0_i32_1 = arith.constant 0 : i32
    return %c0_i32, %c0_i32_0 : i32, i32
  }
  func.func @transform_4(%arg0: i32) -> (i32, i32) {
    %c0_i32 = arith.constant 0 : i32
    %c0_i32_0 = arith.constant 0 : i32
    %c0_i32_1 = arith.constant 0 : i32
    return %c0_i32, %c0_i32_0 : i32, i32
  }
  func.func @transform_5(%arg0: i32) -> (i32, i32) {
    %c0_i32 = arith.constant 0 : i32
    %c0_i32_0 = arith.constant 0 : i32
    %c0_i32_1 = arith.constant 0 : i32
    return %c0_i32, %c0_i32_0 : i32, i32
  }
}

</mosaic_0001>

<bundles_post_ra>
// kernel: tpu_custom_call.1
= control target key start
LH: loop header
LB: loop body
LE: loop exit
PB: predicated region body
PF: predicated region fallthrough
CT: control target
= control target key end

     0   :  { %10 = vsyncpa [#allocation3], 0  ;;  %s1246_s0 = inlined_call_operand.hbm [shape: bf16[2,784], index: 0, kind: input, shape index: {}]   ;;  %s1247_s1 = inlined_call_operand.hbm [shape: bf16[784,128], index: 1, kind: input, shape index: {}]   ;;  %s1248_s2 = inlined_call_operand.vmem [shape: f32[1,128], index: 2, kind: input, shape index: {}]   ;;  %s1249_s3 = inlined_call_operand.hbm [shape: bf16[128,128], index: 3, kind: input, shape index: {}]   ;;  %s1250_s4 = inlined_call_operand.vmem [shape: f32[1,128], index: 4, kind: input, shape index: {}]   ;;  %s1251_s5 = inlined_call_operand.hbm [shape: f32[2,128], index: 5, kind: output, shape index: {}]  }
   0x1   :  { %11 = vsyncpa [#allocation6], 0 }
   0x2   :  { %12 = vsyncpa [#allocation4], 0  ;;  %s1134_s18 = smov [#allocation5]   ;;  %s1040_s22 = scalar_lea.hbm %s1247_s1, 6272 }
   0x3   :  { %s28_s19 = sshll.u32 %s1134_s18, 4  ;;  %p1041_p0 = scmp.ne.s32.totalorder %s1247_s1, %s1040_s22  ;;  %s29_s19 = int_to_ptr.vmem [resolvable:$true] %s28_s19 }
   0x4   :  { %p1044_p1 = scmp.lt.u32.totalorder %s1040_s22, %s1247_s1 }
   0x6   :  { %p1046_p2 = pnand %p1044_p1, %p1041_p0 }
   0x8   :  { %1049 = shalt.err (!%p1046_p2)
}
   0x9   :  { %s1050_s27 = scalar_lea.vmem %s29_s19, 6272  ;;  %p1055_p4 = scmp.lt.s32.totalorder %s29_s19, %s29_s19 }
   0xa   :  { %p1051_p3 = scmp.ne.s32.totalorder %s29_s19, %s1050_s27  ;;  %p1056_p5 = scmp.lt.s32.totalorder %s1050_s27, %s1050_s27 }
   0xc   :  { %p1057_p6 = por %p1056_p5, %p1055_p4 }
   0xe   :  { %p1058_p7 = pnand %p1057_p6, %p1051_p3 }
  0x10   :  { %1061 = shalt.err (!%p1058_p7)
}
  0x11   :  { %s1135_s28 = smov 64   ;;  %s1136_s29 = smov 4  }
  0x12   :  { %34 = dma.hbm_to_vmem [thread:$0]  %s1247_s1, 6272, %s29_s19, [#allocation6], %s1135_s28, %s1135_s28, %s1136_s29  }
  0x13   :  { %s1137_s7 = smov [#allocation2]   ;;  %s1138_s9 = smov [#allocation7]  }
  0x14   :  { %s19_s8 = sshll.u32 %s1137_s7, 4  ;;  %s42_s10 = sshll.u32 %s1138_s9, 4  ;;  %s20_s8 = int_to_ptr.vmem [resolvable:$true] %s19_s8  ;;  %s43_s10 = int_to_ptr.vmem [resolvable:$true] %s42_s10 }
  0x15   :  { %s1062_s13 = scalar_lea.hbm %s1246_s0, 112 }
  0x16   :  { %p1063_p8 = scmp.ne.s32.totalorder %s1246_s0, %s1062_s13  ;;  %p1066_p9 = scmp.lt.u32.totalorder %s1062_s13, %s1246_s0 }
  0x18   :  { %p1068_p10 = pnand %p1066_p9, %p1063_p8 }
  0x1a   :  { %1071 = shalt.err (!%p1068_p10)
}
  0x1b   :  { %s1072_s1 = scalar_lea.vmem %s20_s8, 112  ;;  %s1076_s18 = scalar_lea.vmem %s20_s8, 128 }
  0x1c   :  { %p1073_p11 = scmp.ne.s32.totalorder %s20_s8, %s1072_s1  ;;  %p1077_p12 = scmp.lt.s32.totalorder %s20_s8, %s20_s8 }
  0x1d   :  { %p1078_p13 = scmp.lt.s32.totalorder %s1076_s18, %s1072_s1 }
  0x1f   :  { %p1079_p0 = por %p1078_p13, %p1077_p12 }
  0x21   :  { %p1080_p1 = pnand %p1079_p0, %p1073_p11 }
  0x23   :  { %1083 = shalt.err (!%p1080_p1)
}
  0x24   :  { %22 = dma.hbm_to_vmem [thread:$0]  %s1246_s0, 112, %s20_s8, [#allocation3]  }
  0x25   :  { %s1084_s23 = scalar_lea.hbm %s1249_s3, 1024 }
  0x26   :  { %p1085_p2 = scmp.ne.s32.totalorder %s1249_s3, %s1084_s23  ;;  %p1088_p3 = scmp.lt.u32.totalorder %s1084_s23, %s1249_s3 }
  0x28   :  { %p1090_p4 = pnand %p1088_p3, %p1085_p2 }
  0x2a   :  { %1093 = shalt.err (!%p1090_p4)
}
  0x2b   :  { %s1094_s30 = scalar_lea.vmem %s43_s10, 1024  ;;  %p1099_p6 = scmp.lt.s32.totalorder %s43_s10, %s43_s10 }
  0x2c   :  { %p1095_p5 = scmp.ne.s32.totalorder %s43_s10, %s1094_s30  ;;  %p1100_p7 = scmp.lt.s32.totalorder %s1094_s30, %s1094_s30 }
  0x2e   :  { %p1101_p8 = por %p1100_p7, %p1099_p6 }
  0x30   :  { %p1102_p9 = pnand %p1101_p8, %p1095_p5 }
  0x32   :  { %1105 = shalt.err (!%p1102_p9)
}
  0x33   :  { %48 = dma.hbm_to_vmem [thread:$0]  %s1249_s3, 1024, %s43_s10, [#allocation6], %s1135_s28, %s1135_s28, %s1136_s29  }
  0x34   :  { %1128 = dma.done.wait [#allocation3], 112  }
  0x35   :  { %1129 = vsyncadd [#allocation3], 4294967184 }
  0x36   :  { %1130 = dma.done.wait [#allocation6], 7296  }
  0x37   :  { %1131 = vsyncadd [#allocation6], 4294960000  ;;  %v982_v0 = vld [vmem:[#allocation5 + $0x40] sm:$0xff]   ;;  %v986_v4 = vld [vmem:[#allocation5 + $0x48] sm:$0xff]   ;;  %v1139_v21 = vmov 1966171168   ;;  %v172_v23 = vlaneseq }
  0x38   :  { %v983_v1 = vld [vmem:[#allocation5] sm:$0xff]   ;;  %870 = vmatprep.subr.bf16.mxu0 %v982_v0  ;;  %v987_v5 = vld [vmem:[#allocation5 + $0x8] sm:$0xff]   ;;  %v990_v8 = vld [vmem:[#allocation5 + $0x50] sm:$0xff]   ;;  %v170_v22 = vunpack.c.l.s4 %v1139_v21  ;;  %v1140_v45 = vmov 0.0   ;;  %vm1141_vm0 = vmmov 0   ;;  %vm516_vm1 = vcmask 130048  }
  0x39   :  { %v984_v2 = vld [vmem:[#allocation5 + $0xc0] sm:$0xff]   ;;  %871 = vmatpush3.bf16.msra.mxu0 %v983_v1  ;;  %v988_v6 = vld [vmem:[#allocation5 + $0xc8] sm:$0xff]   ;;  %v991_v9 = vld [vmem:[#allocation5 + $0x10] sm:$0xff]   ;;  %v173_v29 = vshrl.u32 %v172_v23, 7  ;;  %s1142_s7 = smov [#allocation8]  }
  0x3a   :  { %v985_v3 = vld [vmem:[#allocation5 + $0x80] sm:$0xff]   ;;  %892 = vmatprep.subr.bf16.mxu1 %v984_v2  ;;  %872 = vmatprep.subr.bf16.mxu0 %v986_v4  ;;  %v989_v7 = vld [vmem:[#allocation5 + $0x88] sm:$0xff]   ;;  %v992_v10 = vld [vmem:[#allocation5 + $0xd0] sm:$0xff]   ;;  %v171_v28 = vunpack.c.0.s8 %v170_v22  ;;  %s800_s8 = sshll.u32 %s1142_s7, 4  ;;  %s801_s8 = int_to_ptr.vmem [resolvable:$true] %s800_s8 }
  0x3b   :  { %893 = vmatpush3.bf16.msra.mxu1 %v985_v3  ;;  %v993_v11 = vld [vmem:[#allocation5 + $0x90] sm:$0xff]   ;;  %v994_v12 = vld [vmem:[#allocation5 + $0x58] sm:$0xff]   ;;  %v998_v16 = vld [vmem:[#allocation5 + $0x60] sm:$0xff]   ;;  %s1106_s9 = scalar_lea.vmem %s801_s8, 32  ;;  %p1111_p11 = scmp.lt.s32.totalorder %s801_s8, %s801_s8 }
  0x3c   :  { %894 = vmatprep.subr.bf16.mxu1 %v988_v6  ;;  %v995_v13 = vld [vmem:[#allocation5 + $0x18] sm:$0xff]   ;;  %v999_v17 = vld [vmem:[#allocation5 + $0x20] sm:$0xff]   ;;  %v1002_v20 = vld [vmem:[#allocation5 + $0x68] sm:$0xff]   ;;  %v174_v34 = vsub.s32 %v171_v28, %v173_v29  ;;  %p1107_p10 = scmp.ne.s32.totalorder %s801_s8, %s1106_s9  ;;  %p1112_p12 = scmp.lt.s32.totalorder %s1106_s9, %s1106_s9 }
  0x3d   :  { %873 = vmatpush3.bf16.msra.mxu0 %v987_v5  ;;  %v996_v14 = vld [vmem:[#allocation5 + $0xd8] sm:$0xff]   ;;  %v1000_v18 = vld [vmem:[#allocation5 + $0xe0] sm:$0xff]   ;;  %v1003_v24 = vld [vmem:[#allocation5 + $0x28] sm:$0xff]  }
  0x3e   :  { %874 = vmatprep.subr.bf16.mxu0 %v990_v8  ;;  %v997_v15 = vld [vmem:[#allocation5 + $0x98] sm:$0xff]   ;;  %v1001_v19 = vld [vmem:[#allocation5 + $0xa0] sm:$0xff]   ;;  %v1004_v25 = vld [vmem:[#allocation5 + $0xe8] sm:$0xff]   ;;  %p1113_p13 = por %p1112_p12, %p1111_p11 }
  0x3f   :  { %895 = vmatpush3.bf16.msra.mxu1 %v989_v7  ;;  %v1005_v26 = vld [vmem:[#allocation5 + $0xa8] sm:$0xff]   ;;  %v1006_v27 = vld [vmem:[#allocation5 + $0x70] sm:$0xff]   ;;  %v1010_v33 = vld [vmem:[#allocation5 + $0x78] sm:$0xff]  }
  0x40   :  { %896 = vmatprep.subr.bf16.mxu1 %v992_v10  ;;  %v1007_v30 = vld [vmem:[#allocation5 + $0x30] sm:$0xff]   ;;  %v1011_v35 = vld [vmem:[#allocation5 + $0x38] sm:$0xff]   ;;  %v1015_v41 = vld [vmem:[#allocation5 + $0x140] sm:$0xff]   ;;  %p1114_p0 = pnand %p1113_p13, %p1107_p10 }
  0x41   :  { %875 = vmatpush3.bf16.msra.mxu0 %v991_v9  ;;  %v1008_v31 = vld [vmem:[#allocation5 + $0xf0] sm:$0xff]   ;;  %v1012_v36 = vld [vmem:[#allocation5 + $0xf8] sm:$0xff]   ;;  %v1016_v47 = vld [vmem:[#allocation5 + $0x100] sm:$0xff]  }
  0x42   :  { %876 = vmatprep.subr.bf16.mxu0 %v994_v12  ;;  %v1009_v32 = vld [vmem:[#allocation5 + $0xb0] sm:$0xff]   ;;  %v61_v37 = vld [vmem:[#allocation2] sm:$0x7f]  ;;  %v1017_v50 = vld [vmem:[#allocation5 + $0x148] sm:$0xff]  }
  0x43   :  { %897 = vmatpush3.bf16.msra.mxu1 %v993_v11  ;;  %v168_v38 = vcombine.high %v61_v37, %v61_v37  ;;  %v175_v39 = vrot.slane %v61_v37, %v174_v34  ;;  %v1014_v40 = vld [vmem:[#allocation5 + $0xb8] sm:$0xff]   ;;  %v1018_v53 = vld [vmem:[#allocation5 + $0x108] sm:$0xff]   ;;  %v1019_v54 = vld [vmem:[#allocation5 + $0x150] sm:$0xff]  }
  0x44   :  { %898 = vmatprep.subr.bf16.mxu1 %v996_v14  ;;  %v1020_v55 = vld [vmem:[#allocation5 + $0x110] sm:$0xff]   ;;  %v1021_v56 = vld [vmem:[#allocation5 + $0x158] sm:$0xff]   ;;  %v1023_v59 = vld [vmem:[#allocation5 + $0x160] sm:$0xff]  }
  0x45   :  { %877 = vmatpush3.bf16.msra.mxu0 %v995_v13  ;;  %v183_v42 = vcombine.high %v175_v39, %v175_v39  ;;  %v191_v43 = vrot.slane %v175_v39, %v174_v34  ;;  %v182_v44 = vrot.slane %v168_v38, %v174_v34  ;;  %v1022_v58 = vld [vmem:[#allocation5 + $0x118] sm:$0xff]   ;;  %v1031_v60 = vld [vmem:[#allocation5 + $0x180] sm:$0xff]   ;;  %v1025_v63 = vld [vmem:[#allocation5 + $0x168] sm:$0xff]  }
  0x46   :  { %878 = vmatprep.subr.bf16.mxu0 %v998_v16  ;;  %v1024_v61 = vld [vmem:[#allocation5 + $0x120] sm:$0xff]   ;;  %v1026_v0 = vld [vmem:[#allocation5 + $0x128] sm:$0xff]   ;;  %v1027_v1 = vld [vmem:[#allocation5 + $0x170] sm:$0xff]  }
  0x47   :  { %899 = vmatpush3.bf16.msra.mxu1 %v997_v15  ;;  %v205_v46 = vrot.slane %v183_v42, %v174_v34  ;;  %v184_v48 = vcombine.high %v182_v44, %v182_v44  ;;  %v213_v49 = vcombine.high %v191_v43, %v191_v43  ;;  %v198_v57 = vrot.slane %v182_v44, %v174_v34  ;;  %v1028_v2 = vld [vmem:[#allocation5 + $0x130] sm:$0xff]   ;;  %v1029_v3 = vld [vmem:[#allocation5 + $0x178] sm:$0xff]   ;;  %v1032_v5 = vld [vmem:[#allocation7] sm:$0xff]  }
  0x48   :  { %900 = vmatprep.subr.bf16.mxu1 %v1000_v18  ;;  %v1030_v4 = vld [vmem:[#allocation5 + $0x138] sm:$0xff]   ;;  %v1033_v6 = vld [vmem:[#allocation7 + $0x8] sm:$0xff]   ;;  %v1035_v8 = vld [vmem:[#allocation7 + $0x18] sm:$0xff]  }
  0x49   :  { %879 = vmatpush3.bf16.msra.mxu0 %v999_v17  ;;  %552 = vmatprep.mubr.bf16.mxu0 %v205_v46  ;;  %v215_v51 = vcombine.high %v205_v46, %v205_v46  ;;  %v212_v52 = vrot.slane %v184_v48, %v174_v34  ;;  %v214_v62 = vcombine.high %v198_v57, %v198_v57  ;;  %v1034_v7 = vld [vmem:[#allocation7 + $0x10] sm:$0xff]   ;;  %v1036_v9 = vld [vmem:[#allocation7 + $0x20] sm:$0xff]   ;;  %v1037_v10 = vld [vmem:[#allocation7 + $0x28] sm:$0xff]  }
  0x4a   :  { %880 = vmatprep.subr.bf16.mxu0 %v1002_v20  ;;  %v1038_v11 = vld [vmem:[#allocation7 + $0x30] sm:$0xff]   ;;  %v1039_v12 = vld [vmem:[#allocation7 + $0x38] sm:$0xff]  }
  0x4b   :  { %901 = vmatpush3.bf16.msra.mxu1 %v1001_v19  ;;  %592 = vmatprep.mubr.bf16.mxu1 %v215_v51  ;;  %v810_v14 = vld [vmem:[%s1248_s2] ss:$0 sm:$0xff] }
  0x4c   :  { %902 = vmatprep.subr.bf16.mxu1 %v1004_v25  ;;  %v861_v39 = vld [vmem:[%s1250_s4] ss:$0 sm:$0xff] }
  0x4d   :  { %881 = vmatpush3.bf16.msra.mxu0 %v1003_v24 }
  0x4e   :  { %882 = vmatprep.subr.bf16.mxu0 %v1006_v27 }
  0x4f   :  { %903 = vmatpush3.bf16.msra.mxu1 %v1005_v26 }
  0x50   :  { %904 = vmatprep.subr.bf16.mxu1 %v1008_v31 }
  0x51   :  { %883 = vmatpush3.bf16.msra.mxu0 %v1007_v30 }
  0x52   :  { %884 = vmatprep.subr.bf16.mxu0 %v1010_v33 }
  0x53   :  { %905 = vmatpush3.bf16.msra.mxu1 %v1009_v32 }
  0x54   :  { %906 = vmatprep.subr.bf16.mxu1 %v1012_v36 }
  0x55   :  { %885 = vmatpush3.bf16.msra.mxu0 %v1011_v35 }
  0x56   :  { %914 = vmatprep.subr.bf16.mxu0 %v1015_v41 }
  0x57   :  { %907 = vmatpush3.bf16.msra.mxu1 %v1014_v40 }
  0x58   :  { %947 = vmatprep.subr.bf16.mxu1 %v1140_v45  ;;  %553 = vmatmul.mubr.bf16.vlgmr.msra.gmra.mrb[0].mxu0 %v191_v43 }
  0x59   :  { %915 = vmatpush3.bf16.msra.mxu0 %v1016_v47  ;;  %632 = vmatprep.mubr.bf16.mxu0 %v212_v52 }
  0x5a   :  { %593 = vmatmul.mubr.bf16.vlgmr.msra.gmra.mrb[0].mxu1 %v213_v49  ;;  %916 = vmatprep.subr.bf16.mxu0 %v1017_v50 }
  0x5b   :  { %949 = vmatprep.mubr.msk.bf16.mxu1 %vm1141_vm0, %v1140_v45  ;;  %948 = vmatpush3.bf16.msra.mxu1 %v1031_v60 }
  0x5c   :  { %953 = vmatprep.subr.bf16.mxu1 %v1140_v45 }
  0x5d   :  { %917 = vmatpush3.bf16.msra.mxu0 %v1018_v53 }
  0x5e   :  { %918 = vmatprep.subr.bf16.mxu0 %v1019_v54 }
  0x61   :  { %919 = vmatpush3.bf16.msra.mxu0 %v1020_v55 }
  0x62   :  { %920 = vmatprep.subr.bf16.mxu0 %v1021_v56  ;;  %950 = vmatmul.mubr.msk.bf16.vlgmr.msra.gmra.mrb[4].mxu1 %vm516_vm1, %v214_v62 }
  0x63   :  { %969 = vmatprep.mubr.msk.bf16.mxu1 %vm1141_vm0, %v1140_v45  ;;  %954 = vmatpush3.bf16.msra.mxu1 %v1032_v5 }
  0x64   :  { %955 = vmatprep.subr.bf16.mxu1 %v1140_v45 }
  0x65   :  { %921 = vmatpush3.bf16.msra.mxu0 %v1022_v58 }
  0x66   :  { %922 = vmatprep.subr.bf16.mxu0 %v1023_v59 }
  0x67   :  { %956 = vmatpush3.bf16.msra.mxu1 %v1033_v6 }
  0x68   :  { %957 = vmatprep.subr.bf16.mxu1 %v1140_v45 }
  0x69   :  { %923 = vmatpush3.bf16.msra.mxu0 %v1024_v61 }
  0x6a   :  { %924 = vmatprep.subr.bf16.mxu0 %v1025_v63 }
  0x6b   :  { %958 = vmatpush3.bf16.msra.mxu1 %v1034_v7 }
  0x6c   :  { %959 = vmatprep.subr.bf16.mxu1 %v1140_v45 }
  0x6d   :  { %925 = vmatpush3.bf16.msra.mxu0 %v1026_v0 }
  0x6e   :  { %926 = vmatprep.subr.bf16.mxu0 %v1027_v1 }
  0x6f   :  { %960 = vmatpush3.bf16.msra.mxu1 %v1035_v8 }
  0x70   :  { %961 = vmatprep.subr.bf16.mxu1 %v1140_v45 }
  0x71   :  { %927 = vmatpush3.bf16.msra.mxu0 %v1028_v2 }
  0x72   :  { %928 = vmatprep.subr.bf16.mxu0 %v1029_v3 }
  0x73   :  { %962 = vmatpush3.bf16.msra.mxu1 %v1036_v9 }
  0x74   :  { %963 = vmatprep.subr.bf16.mxu1 %v1140_v45 }
  0x75   :  { %929 = vmatpush3.bf16.msra.mxu0 %v1030_v4 }
  0x77   :  { %964 = vmatpush3.bf16.msra.mxu1 %v1037_v10 }
  0x78   :  { %633 = vmatmul.mubr.bf16.vlgmr.msra.gmra.mrb[4].mxu0 %v198_v57  ;;  %965 = vmatprep.subr.bf16.mxu1 %v1140_v45 }
  0x7b   :  { %966 = vmatpush3.bf16.msra.mxu1 %v1038_v11 }
  0x7c   :  { %967 = vmatprep.subr.bf16.mxu1 %v1140_v45 }
  0x7f   :  { %968 = vmatpush3.bf16.msra.mxu1 %v1039_v12 }
 0x12b   :  { %v886_v13 = vpop.f32.mrb[0].mxu0 }
 0x12c   :  { %v887_v15 = vpop.f32.mrb[1].mxu0 }
 0x12d   :  { %v888_v16 = vadd.f32 %v887_v15, %v886_v13  ;;  %v889_v17 = vpop.f32.mrb[2].mxu0  ;;  %v908_v18 = vpop.f32.mrb[0].mxu1 }
 0x12e   :  { %v890_v19 = vpop.f32.mrb[3].mxu0  ;;  %v909_v20 = vpop.f32.mrb[1].mxu1 }
 0x12f   :  { %v555_v21 = vadd.f32 %v888_v16, %v810_v14  ;;  %v910_v22 = vadd.f32 %v909_v20, %v908_v18  ;;  %v911_v23 = vpop.f32.mrb[2].mxu1 }
 0x130   :  { %v912_v24 = vpop.f32.mrb[3].mxu1 }
 0x131   :  { %v595_v25 = vadd.f32 %v910_v22, %v555_v21 }
 0x135   :  { %v674_v26 = vpop.f32.mrb[4].mxu1 }
 0x136   :  { %v951_v27 = vpop.f32.mrb[5].mxu1 }
 0x137   :  { %v677_v28 = vpop.f32.mrb[6].mxu1 }
 0x138   :  { %v952_v29 = vpop.f32.mrb[7].mxu1 }
 0x14b   :  { %v930_v30 = vpop.f32.mrb[4].mxu0 }
 0x14c   :  { %v931_v31 = vpop.f32.mrb[5].mxu0 }
 0x14d   :  { %v932_v32 = vadd.f32 %v931_v31, %v930_v30  ;;  %v933_v33 = vpop.f32.mrb[6].mxu0 }
 0x14e   :  { %v934_v34 = vpop.f32.mrb[7].mxu0 }
 0x14f   :  { %v635_v35 = vadd.f32 %v932_v32, %v595_v25 }
 0x151   :  { %v675_v36 = vadd.f32 %v674_v26, %v635_v35 }
 0x153   :  { %v680_v37 = vmax.f32 %v675_v36, 0.0 }
 0x155   :  { %v681_v38 = vpack.c.bf16 %v680_v37, %v680_v37 }
 0x157   :  { %970 = vmatmul.mubr.bf16.vlgmr.msra.gmra.mrb[8].mxu1 %v681_v38 }
 0x22a   :  { %v787_v40 = vpop.f32.mrb[8].mxu1 }
 0x22b   :  { %v788_v41 = vadd.f32 %v861_v39, %v787_v40  ;;  %v971_v42 = vpop.f32.mrb[9].mxu1 }
 0x22c   :  { %v790_v43 = vpop.f32.mrb[10].mxu1 }
 0x22d   :  { %793 = vst [vmem:[#allocation8] sm:$0x3] %v788_v41  ;;  %v972_v44 = vpop.f32.mrb[11].mxu1 }
 0x22e   :  { %1117 = shalt.err (!%p1114_p0)
}
 0x22f   :  { %s1118_s4 = scalar_lea.hbm %s1251_s5, 32 }
 0x230   :  { %p1119_p1 = scmp.ne.s32.totalorder %s1251_s5, %s1118_s4  ;;  %p1122_p2 = scmp.lt.u32.totalorder %s1118_s4, %s1251_s5 }
 0x232   :  { %p1124_p3 = pnand %p1122_p2, %p1119_p1 }
 0x234   :  { %1127 = shalt.err (!%p1124_p3)
}
 0x235   :  { %803 = dma.vmem_to_hbm [thread:$0]  %s801_s8, 32, %s1251_s5, [#allocation4]  }
 0x236   :  { %1132 = dma.done.wait [#allocation4], 32  }
 0x237   :  { %1133 = vsyncadd [#allocation4], 4294967264 }
 0x238   :  { %807 = vsyncpa [#allocation3], 1 }
 0x239   :  { %808 = vsyncpa [#allocation6], 1 }
 0x23a   :  { %809 = vsyncpa [#allocation4], 1 }

</bundles_post_ra>
